<compile_context>
chip_gen: v6e
topology: v6e:2x2x1
jax: 0.10.0
libtpu: 0.0.40
codegen_flags: <defaults>
</compile_context>

<pallas_src>
import jax
import jax.numpy as jnp
from jax.experimental import pallas as pl
from jax.experimental.pallas import tpu as pltpu

IN_FEATURES = 10
OUT_FEATURES = 5
KERNEL_SIZE = 2
SCALE_FACTOR = 0.5
NUM_POOLED = OUT_FEATURES // KERNEL_SIZE          # floor, matches F.max_pool1d -> 2

# Batch folding: G batch rows share one lane-row (G * IN_FEATURES = 120 <= 128 lanes).
G = 12
FOLD_W = G * IN_FEATURES                          # 120 input lanes per folded row
SEC_W = NUM_POOLED * G                            # 24 lanes per kernel-tap section
NCOLS = KERNEL_SIZE * SEC_W                       # 48 matmul output lanes

DEFAULT_BLOCK_ROWS = 8192                         # folded rows per grid step (~3.9 MB of x)


def _fused_kernel(x_ref, w_ref, b_ref, o_ref):
    # x_ref: (R, FOLD_W)    -- G batch rows folded per lane-row
    # w_ref: (FOLD_W, NCOLS) block-diagonal weight (resident across grid steps)
    # b_ref: (1, NCOLS)      bias, tiled to match the folded column layout
    # o_ref: (R, G)          -- lane g of row r = result for batch row r*G + g
    y = jax.lax.dot_general(
        x_ref[...], w_ref[...],
        dimension_numbers=(((1,), (0,)), ((), ())),   # plain (M,K)@(K,N)
        preferred_element_type=jnp.float32,
    ) + b_ref[...]

    # Max over the KERNEL_SIZE taps: tap k occupies lanes [k*SEC_W, (k+1)*SEC_W).
    m = y[:, :SEC_W]
    for k in range(1, KERNEL_SIZE):                   # static tiny unroll
        m = jnp.maximum(m, y[:, k * SEC_W:(k + 1) * SEC_W])

    # Sum over pooled windows: window p occupies lanes [p*G, (p+1)*G) of m.
    s = m[:, :G]
    for p in range(1, NUM_POOLED):
        s = s + m[:, p * G:(p + 1) * G]

    o_ref[...] = s * SCALE_FACTOR


def _fold_params(weight, bias):
    """Build the (FOLD_W, NCOLS) block-diagonal weight and (1, NCOLS) bias so that
    y[:, k*SEC_W + p*G + g] = Linear(x)[row*G + g, p*KERNEL_SIZE + k]."""
    w_t = weight.T.astype(jnp.float32)                # (IN_FEATURES, OUT_FEATURES)
    b = bias.astype(jnp.float32)
    eye = jnp.eye(G, dtype=jnp.float32)
    cols = [p * KERNEL_SIZE + k for k in range(KERNEL_SIZE) for p in range(NUM_POOLED)]
    w_big = jnp.concatenate([jnp.kron(eye, w_t[:, c:c + 1]) for c in cols], axis=1)
    b_big = jnp.concatenate(
        [jnp.full((G,), b[c], jnp.float32) for c in cols]).reshape(1, NCOLS)
    return w_big, b_big


def fused_linear_pool_sum_scale(x, weight, bias, *, block_rows=DEFAULT_BLOCK_ROWS):
    """x: (B, IN_FEATURES) f32; weight: (OUT_FEATURES, IN_FEATURES) (nn.Linear layout);
    bias: (OUT_FEATURES,).  Returns (B,) f32 matching Model.forward."""
    B = x.shape[0]
    x = x.astype(jnp.float32)

    rows = pl.cdiv(B, G)                              # folded rows needed
    rows8 = ((rows + 7) // 8) * 8                     # rounded to the sublane multiple

    # Folded-row tile: multiple of 8, no larger than needed.
    r = max(8, min(int(block_rows), rows8))
    r = max(8, (r // 8) * 8)                          # robustness for caller-supplied sizes
    # Prefer >=2 grid steps when possible so "parallel" shards across v7x's two TCs.
    if rows > 8 and r >= rows8:
        r = max(8, ((pl.cdiv(rows, 2) + 7) // 8) * 8)

    padded_rows = pl.cdiv(rows, r) * r
    padded_B = padded_rows * G
    if padded_B != B:
        x = jnp.pad(x, ((0, padded_B - B), (0, 0)))
    x_fold = x.reshape(padded_rows, FOLD_W)           # free (row-major) reshape

    w_big, b_big = _fold_params(weight, bias)

    out = pl.pallas_call(
        _fused_kernel,
        out_shape=jax.ShapeDtypeStruct((padded_rows, G), jnp.float32),
        grid=(padded_rows // r,),
        in_specs=[
            pl.BlockSpec((r, FOLD_W), lambda i: (i, 0)),
            pl.BlockSpec((FOLD_W, NCOLS), lambda i: (0, 0)),   # resident
            pl.BlockSpec((1, NCOLS), lambda i: (0, 0)),        # resident
        ],
        out_specs=pl.BlockSpec((r, G), lambda i: (i, 0)),
        compiler_params=pltpu.CompilerParams(
            dimension_semantics=("parallel",),
            vmem_limit_bytes=48 * 1024 * 1024,        # ~16 MiB actually used at r=8192
        ),
    )(x_fold, w_big, b_big)

    return out.reshape(padded_B)[:B]


def _reference(x, weight, bias):
    y = x @ weight.T + bias
    y = y[:, :NUM_POOLED * KERNEL_SIZE].reshape(x.shape[0], NUM_POOLED, KERNEL_SIZE)
    return jnp.sum(jnp.max(y, axis=-1), axis=-1) * SCALE_FACTOR


if __name__ == "__main__":
    key = jax.random.PRNGKey(0)
    kx, kw, kb = jax.random.split(key, 3)

    B = 8
    x = jax.random.normal(kx, (B, IN_FEATURES), dtype=jnp.float32)
    # Deterministic init mimicking nn.Linear's uniform(-1/sqrt(fan_in), 1/sqrt(fan_in))
    bound = 1.0 / (IN_FEATURES ** 0.5)
    weight = jax.random.uniform(kw, (OUT_FEATURES, IN_FEATURES), jnp.float32, -bound, bound)
    bias = jax.random.uniform(kb, (OUT_FEATURES,), jnp.float32, -bound, bound)

    out = jax.block_until_ready(fused_linear_pool_sum_scale(x, weight, bias))
    ref = _reference(x, weight, bias)
    assert out.shape == (B,)
    assert jnp.allclose(out, ref, atol=1e-4, rtol=1e-4), (out, ref)

    # Non-divisible batch + multi-step grid (exercises folding, padding and tiling).
    B2 = 200
    x2 = jax.random.normal(jax.random.PRNGKey(1), (B2, IN_FEATURES), dtype=jnp.float32)
    out2 = jax.block_until_ready(
        fused_linear_pool_sum_scale(x2, weight, bias, block_rows=8))
    ref2 = _reference(x2, weight, bias)
    assert out2.shape == (B2,)
    assert jnp.allclose(out2, ref2, atol=1e-4, rtol=1e-4), (out2, ref2)

    print("KERNEL_OK")
</pallas_src>

<mosaic_0001>
module attributes {stable_mosaic.version = 11 : i64} {
  func.func @_fused_kernel(%arg0: i32, %arg1: memref<8x120xf32, #tpu.memory_space<vmem>>, %arg2: memref<120x48xf32, #tpu.memory_space<vmem>>, %arg3: memref<1x48xf32, #tpu.memory_space<vmem>>, %arg4: memref<8x12xf32, #tpu.memory_space<vmem>>) attributes {dimension_semantics = [#tpu.dimension_semantics<parallel>], iteration_bounds = array<i64: 1>, scalar_prefetch = 0 : i64, scratch_operands = 0 : i64, tpu.core_type = #tpu.core_type<tc>, window_params = [{transform_indices = @transform_0, window_bounds = array<i64: 8, 120>}, {pipeline_mode = #tpu.pipeline_mode<synchronous>, transform_indices = @transform_1, window_bounds = array<i64: 120, 48>}, {pipeline_mode = #tpu.pipeline_mode<synchronous>, transform_indices = @transform_2, window_bounds = array<i64: 1, 48>}, {transform_indices = @transform_3, window_bounds = array<i64: 8, 12>}]} {
    %c0 = arith.constant 0 : index
    %c0_0 = arith.constant 0 : index
    %0 = vector.load %arg1[%c0, %c0_0] : memref<8x120xf32, #tpu.memory_space<vmem>>, vector<8x120xf32>
    %c0_1 = arith.constant 0 : index
    %c0_2 = arith.constant 0 : index
    %1 = vector.load %arg2[%c0_1, %c0_2] : memref<120x48xf32, #tpu.memory_space<vmem>>, vector<120x48xf32>
    %cst = arith.constant dense<0.000000e+00> : vector<8x48xf32>
    %2 = tpu.matmul %0, %1, %cst {dimension_numbers = #tpu.dot_dimension_numbers<[1], [0], [0], [1], [0, 0, 1, 1], [], []>} : vector<8x120xf32>, vector<120x48xf32>, vector<8x48xf32> -> vector<8x48xf32>
    %c0_3 = arith.constant 0 : index
    %c0_4 = arith.constant 0 : index
    %3 = vector.load %arg3[%c0_3, %c0_4] : memref<1x48xf32, #tpu.memory_space<vmem>>, vector<1x48xf32>
    %4 = vector.broadcast %3 : vector<1x48xf32> to vector<8x48xf32>
    %5 = arith.addf %2, %4 : vector<8x48xf32>
    %6 = vector.extract_strided_slice %5 {offsets = [0, 0], sizes = [8, 24], strides = [1, 1]} : vector<8x48xf32> to vector<8x24xf32>
    %7 = vector.extract_strided_slice %5 {offsets = [0, 24], sizes = [8, 24], strides = [1, 1]} : vector<8x48xf32> to vector<8x24xf32>
    %8 = arith.maximumf %6, %7 : vector<8x24xf32>
    %9 = vector.extract_strided_slice %8 {offsets = [0, 0], sizes = [8, 12], strides = [1, 1]} : vector<8x24xf32> to vector<8x12xf32>
    %10 = vector.extract_strided_slice %8 {offsets = [0, 12], sizes = [8, 12], strides = [1, 1]} : vector<8x24xf32> to vector<8x12xf32>
    %11 = arith.addf %9, %10 : vector<8x12xf32>
    %cst_5 = arith.constant 5.000000e-01 : f32
    %12 = vector.broadcast %cst_5 : f32 to vector<8x12xf32>
    %13 = arith.mulf %11, %12 : vector<8x12xf32>
    %c0_6 = arith.constant 0 : index
    %c0_7 = arith.constant 0 : index
    %14 = vector.load %arg4[%c0_6, %c0_7] : memref<8x12xf32, #tpu.memory_space<vmem>>, vector<8x12xf32>
    tpu.vector_store %arg4[%c0_6, %c0_7], %13 {strides = array<i32>} : memref<8x12xf32, #tpu.memory_space<vmem>>, vector<8x12xf32>,
    return
  }
  func.func @transform_0(%arg0: i32) -> (i32, i32) {
    %c0_i32 = arith.constant 0 : i32
    %c0_i32_0 = arith.constant 0 : i32
    return %arg0, %c0_i32 : i32, i32
  }
  func.func @transform_1(%arg0: i32) -> (i32, i32) {
    %c0_i32 = arith.constant 0 : i32
    %c0_i32_0 = arith.constant 0 : i32
    %c0_i32_1 = arith.constant 0 : i32
    return %c0_i32, %c0_i32_0 : i32, i32
  }
  func.func @transform_2(%arg0: i32) -> (i32, i32) {
    %c0_i32 = arith.constant 0 : i32
    %c0_i32_0 = arith.constant 0 : i32
    %c0_i32_1 = arith.constant 0 : i32
    return %c0_i32, %c0_i32_0 : i32, i32
  }
  func.func @transform_3(%arg0: i32) -> (i32, i32) {
    %c0_i32 = arith.constant 0 : i32
    %c0_i32_0 = arith.constant 0 : i32
    return %arg0, %c0_i32 : i32, i32
  }
}

</mosaic_0001>

<bundles_post_ra>
// kernel: tpu_custom_call.1
= control target key start
LH: loop header
LB: loop body
LE: loop exit
PB: predicated region body
PF: predicated region fallthrough
CT: control target
= control target key end

     0   :  { %v217_v1 = vmov 0.0   ;;  %vm218_vm0 = vmmov 0   ;;  %s296_s0 = inlined_call_operand.vmem [shape: f32[8,120], index: 0, kind: input, shape index: {}]   ;;  %s297_s1 = inlined_call_operand.vmem [shape: f32[120,48], index: 1, kind: input, shape index: {}]   ;;  %s298_s2 = inlined_call_operand.vmem [shape: f32[1,48], index: 2, kind: input, shape index: {}]   ;;  %s299_s3 = inlined_call_operand.hbm [shape: f32[8,12], index: 3, kind: output, shape index: {}]  }
   0x1   :  { %v30_v0 = vld [vmem:[%s297_s1 + $0x70] sm:$0xff]  ;;  %157 = vmatprep.subr.mxu0 %v217_v1  ;;  %v29_v2 = vld [vmem:[%s297_s1 + $0x68] sm:$0xff]  ;;  %187 = vmatprep.mubr.msk.f32.mxu0 %vm218_vm0, %v217_v1  ;;  %v28_v3 = vld [vmem:[%s297_s1 + $0x60] sm:$0xff] }
   0x2   :  { %158 = vmatpush3.msra.mxu0 %v30_v0  ;;  %v27_v4 = vld [vmem:[%s297_s1 + $0x58] sm:$0xff] }
   0x3   :  { %159 = vmatprep.subr.mxu0 %v217_v1 }
   0x4   :  { %160 = vmatpush3.msra.mxu0 %v29_v2 }
   0x5   :  { %161 = vmatprep.subr.mxu0 %v217_v1 }
   0x6   :  { %8 = vsyncpa [#allocation3], 0  ;;  %162 = vmatpush3.msra.mxu0 %v28_v3  ;;  %v26_v5 = vld [vmem:[%s297_s1 + $0x50] sm:$0xff]  ;;  %v25_v6 = vld [vmem:[%s297_s1 + $0x48] sm:$0xff]  ;;  %vm38_vm1 = vcmask 982016   ;;  %s219_s19 = smov 104  }
   0x7   :  { %163 = vmatprep.subr.mxu0 %v217_v1  ;;  %v24_v7 = vld [vmem:[%s297_s1 + $0x40] sm:$0xff]  ;;  %v23_v8 = vld [vmem:[%s297_s1 + $0x38] sm:$0xff]  ;;  %v22_v9 = vld [vmem:[%s297_s1 + $0x30] sm:$0xff]  ;;  %s221_s20 = smov [#allocation2]   ;;  %vm123_vm2 = vcmask 97280  }
   0x8   :  { %164 = vmatpush3.msra.mxu0 %v27_v4  ;;  %v21_v10 = vld [vmem:[%s297_s1 + $0x28] sm:$0xff]  ;;  %v20_v11 = vld [vmem:[%s297_s1 + $0x20] sm:$0xff]  ;;  %v19_v12 = vld [vmem:[%s297_s1 + $0x18] sm:$0xff] }
   0x9   :  { %165 = vmatprep.subr.mxu0 %v217_v1  ;;  %v18_v13 = vld [vmem:[%s297_s1 + $0x10] sm:$0xff]  ;;  %v17_v14 = vld [vmem:[%s297_s1 + $0x8] sm:$0xff]  ;;  %v16_v15 = vld [vmem:[%s297_s1] sm:$0xff]  ;;  %s220_s1 = smov 116  }
   0xa   :  { %166 = vmatpush3.msra.mxu0 %v26_v5  ;;  %v15_v16 = vld [vmem:[%s296_s0] sm:$0xff]  ;;  %s131_s0 = sshll.u32 %s221_s20, 4  ;;  %s132_s0 = int_to_ptr.vmem [resolvable:$true] %s131_s0 }
   0xb   :  { %167 = vmatprep.subr.mxu0 %v217_v1  ;;  %v139_v17 = vld [vmem:[%s298_s2] ss:$0 sm:$0xff]  ;;  %s195_s21 = scalar_lea.vmem %s132_s0, 128  ;;  %p200_p1 = scmp.lt.s32.totalorder %s132_s0, %s132_s0 }
   0xc   :  { %168 = vmatpush3.msra.mxu0 %v25_v6  ;;  %p196_p0 = scmp.ne.s32.totalorder %s132_s0, %s195_s21  ;;  %p201_p2 = scmp.lt.s32.totalorder %s195_s21, %s195_s21 }
   0xd   :  { %169 = vmatprep.subr.mxu0 %v217_v1 }
   0xe   :  { %170 = vmatpush3.msra.mxu0 %v24_v7  ;;  %p202_p3 = por %p201_p2, %p200_p1 }
   0xf   :  { %171 = vmatprep.subr.mxu0 %v217_v1 }
  0x10   :  { %172 = vmatpush3.msra.mxu0 %v23_v8  ;;  %p203_p4 = pnand %p202_p3, %p196_p0 }
  0x11   :  { %173 = vmatprep.subr.mxu0 %v217_v1 }
  0x12   :  { %174 = vmatpush3.msra.mxu0 %v22_v9 }
  0x13   :  { %175 = vmatprep.subr.mxu0 %v217_v1 }
  0x14   :  { %176 = vmatpush3.msra.mxu0 %v21_v10 }
  0x15   :  { %177 = vmatprep.subr.mxu0 %v217_v1 }
  0x16   :  { %178 = vmatpush3.msra.mxu0 %v20_v11 }
  0x17   :  { %179 = vmatprep.subr.mxu0 %v217_v1 }
  0x18   :  { %180 = vmatpush3.msra.mxu0 %v19_v12 }
  0x19   :  { %181 = vmatprep.subr.mxu0 %v217_v1 }
  0x1a   :  { %182 = vmatpush3.msra.mxu0 %v18_v13 }
  0x1b   :  { %183 = vmatprep.subr.mxu0 %v217_v1 }
  0x1c   :  { %184 = vmatpush3.msra.mxu0 %v17_v14 }
  0x1d   :  { %185 = vmatprep.subr.mxu0 %v217_v1 }
  0x1e   :  { %186 = vmatpush3.msra.mxu0 %v16_v15 }
  0x1f   :  { %188 = vmatmul.mubr.msk.f32.vlgmr.msra.gmra.mxu0 %vm38_vm1, %v15_v16 }
  0xdf   :  { %v108_v18 = vpop.f32.mrf.mxu0 }
  0xe0   :  { %v109_v19 = vadd.f32 %v139_v17, %v108_v18 }
  0xe1   :  { %v189_v20 = vpop.f32.mrf.mxu0 }
  0xe2   :  { %113 = vrot.lane.b32.xlu0 %v109_v19, %s219_s19 }
 0x154   :  { %v114_v21 = vpop.permute.xlu0 %113 }
 0x155   :  { %v116_v22 = vmax.f32 %v109_v19, %v114_v21 }
 0x157   :  { %118 = vrot.lane.b32.xlu0 %v116_v22, %s220_s1 }
 0x1c9   :  { %v119_v23 = vpop.permute.xlu0 %118 }
 0x1ca   :  { %v121_v24 = vadd.f32 %v119_v23, %v116_v22 }
 0x1cc   :  { %v122_v25 = vmul.f32 0.5, %v121_v24 }
 0x1ce   :  { %124 = vst.msk [vmem:[#allocation2] sm:$0xff] %vm123_vm2, %v122_v25 }
 0x1cf   :  { %206 = shalt.err (!%p203_p4)
}
 0x1d0   :  { %134 = dma.vmem_to_hbm [thread:$0]  %s132_s0, 128, %s299_s3, [#allocation3]  }
 0x1d1   :  { %215 = dma.done.wait [#allocation3], 128  }
 0x1d2   :  { %216 = vsyncadd [#allocation3], 4294967168 }
 0x1d3   :  { %138 = vsyncpa [#allocation3], 1 }

</bundles_post_ra>
